<compile_context>
chip_gen: v5e
topology: v5e:2x2
jax: 0.10.0
libtpu: 0.0.40
codegen_flags: <defaults>
</compile_context>

<pallas_src>
import functools

import jax
import jax.numpy as jnp
from jax.experimental import pallas as pl
from jax.experimental.pallas import tpu as pltpu

INPUT_SIZE = 16          # `input_size` of Net in the demo
H1, H2, H3 = 64, 32, 1   # fc1 / fc2 / fc3 output widths


def _round_up(n: int, m: int) -> int:
    return ((n + m - 1) // m) * m


def mlp_kernel(x_ref, w1_ref, b1_ref, w2_ref, b2_ref, w3_ref, b3_ref, o_ref,
               *, chunk, num_chunks):
    """One batch tile of the fused 3-layer MLP, evaluated feature-major so the
    width-1 tail and the output stores are lane-dense.

      x_ref : (TB, 16)  bf16/f32  (batch on sublanes, as delivered from HBM)
      w1    : (64, 16)  bf16      b1: (64, 1) f32
      w2    : (32, 64)  bf16      b2: (32, 1) f32
      w3    : (32, 1)   f32       b3: (1, 1)  f32
      o_ref : (1, TB)   f32       (batch on lanes -> unmasked dense stores)
    """
    h1_dim = b1_ref.shape[0]
    h2_dim = b2_ref.shape[0]

    # Loop-invariant loads / broadcasts hoisted out of the chunk loop
    # (JAX does not CSE broadcast_in_dim).
    w1 = w1_ref[...]
    w2 = w2_ref[...]
    b1 = jnp.broadcast_to(b1_ref[...], (h1_dim, chunk))
    b2 = jnp.broadcast_to(b2_ref[...], (h2_dim, chunk))
    b3 = jnp.broadcast_to(b3_ref[...], (1, chunk))
    w3 = jnp.broadcast_to(w3_ref[...], (h2_dim, chunk))

    def body(c, carry):
        off = pl.multiple_of(c * chunk, 128)
        xc = x_ref[pl.ds(off, chunk), :].astype(jnp.bfloat16)        # (chunk, 16)

        # fc1 + relu:  h1^T = w1 @ x^T  -> (64, chunk), batch on lanes.
        h1 = jnp.dot(w1, xc.T, preferred_element_type=jnp.float32)
        h1 = jnp.maximum(h1 + b1, 0.0)

        # dropout(p=0.2): identity at inference time.
        # TODO(synk): training-mode dropout (pltpu.prng_random_bits mask) not implemented.

        # fc2 + relu: (32, 64) @ (64, chunk) -> (32, chunk)
        h2 = jnp.dot(w2, h1.astype(jnp.bfloat16),
                     preferred_element_type=jnp.float32)
        h2 = jnp.maximum(h2 + b2, 0.0)

        # fc3 (output width 1): VPU multiply + sublane reduction. Result is
        # (1, chunk) == lane-dense, so the sigmoid tail runs on full vregs and
        # the store below is an unmasked dense vst (no masked vst.msk per row).
        z = jnp.sum(h2 * w3, axis=0, keepdims=True) + b3

        # sigmoid: EUP exp + EUP approximate reciprocal (no VPU divide).
        o_ref[:, pl.ds(off, chunk)] = pl.reciprocal(
            1.0 + jnp.exp(-z), approx=True).astype(o_ref.dtype)
        return carry

    jax.lax.fori_loop(0, num_chunks, body, None, unroll=(num_chunks <= 16))


@functools.partial(jax.jit, static_argnames=("block_b",))
def net_forward(x, w1, b1, w2, b2, w3, b3, *, block_b=4096):
    """Forward pass of Net.

    x  : (B, input_size) f32 or bf16.  The bf16 HBM-bandwidth saving only
         exists if the caller supplies bf16 activations; f32 x streams from HBM
         as f32 and is cast to bf16 in-register (we do NOT pre-cast here).
    w1 : (64, input_size), b1: (64,)     -- PyTorch nn.Linear layout [out, in]
    w2 : (32, 64),         b2: (32,)
    w3 : (1, 32),          b3: (1,)
    returns (B, 1) f32.
    """
    B, F = x.shape
    h1_dim, f_in = w1.shape
    h2_dim = w2.shape[0]
    assert f_in == F

    # ---- batch tile ---------------------------------------------------------
    # Large tiles amortize the ~0.35 us fixed per-grid-step overhead. Always a
    # multiple of 128. No forced >=2-step split (pure overhead on 1-TC chips).
    tb = max(128, min(_round_up(block_b, 128), _round_up(B, 128)))
    num_tiles = pl.cdiv(B, tb)
    bp = num_tiles * tb

    # In-kernel sub-chunking keeps f32 intermediates bounded (~0.3 MB) no
    # matter how large the DMA tile is.
    chunk = 512 if tb % 512 == 0 else 128
    num_chunks = tb // chunk

    # ---- weight / bias prep (~3K params -> negligible) ----------------------
    w1b = w1.astype(jnp.bfloat16)                      # (64, 16)
    w2b = w2.astype(jnp.bfloat16)                      # (32, 64)
    w3c = w3.reshape(h2_dim, 1).astype(jnp.float32)    # (1, 32) -> (32, 1)
    b1c = b1.reshape(h1_dim, 1).astype(jnp.float32)
    b2c = b2.reshape(h2_dim, 1).astype(jnp.float32)
    b3c = b3.reshape(1, 1).astype(jnp.float32)

    const = lambda shape: pl.BlockSpec(shape, lambda i: (0, 0))
    kernel = functools.partial(mlp_kernel, chunk=chunk, num_chunks=num_chunks)

    # Ragged batches: grid = ceil(B / tb); the last x block may read past row
    # B-1 (undefined rows, never used) instead of paying a full jnp.pad copy.
    # The lane-dense (1, bp) output is allocated padded and sliced below.
    out = pl.pallas_call(
        kernel,
        out_shape=jax.ShapeDtypeStruct((1, bp), jnp.float32),
        grid_spec=pltpu.PrefetchScalarGridSpec(
            num_scalar_prefetch=0,
            grid=(num_tiles,),
            in_specs=[
                pl.BlockSpec((tb, F), lambda i: (i, 0)),
                const((h1_dim, F)), const((h1_dim, 1)),
                const((h2_dim, h1_dim)), const((h2_dim, 1)),
                const((h2_dim, 1)), const((1, 1)),
            ],
            out_specs=pl.BlockSpec((1, tb), lambda i: (0, i)),
        ),
        compiler_params=pltpu.CompilerParams(
            dimension_semantics=("parallel",),
            # Footprint is < 5 MiB even at tb=32K thanks to chunking; 32 MiB is
            # safe on every generation (v5e default scoped limit is only 16 MiB).
            vmem_limit_bytes=32 * 1024 * 1024,
        ),
    )(x, w1b, b1c, w2b, b2c, w3c, b3c)

    return out[0, :B].reshape(B, 1)


def init_params(key, input_size):
    """Deterministic init matching nn.Linear shapes/layout (uniform +/- 1/sqrt(fan_in))."""
    ks = jax.random.split(key, 6)

    def linear(kw, kb, fan_in, fan_out):
        bound = 1.0 / (fan_in ** 0.5)
        w = jax.random.uniform(kw, (fan_out, fan_in), jnp.float32, -bound, bound)
        b = jax.random.uniform(kb, (fan_out,), jnp.float32, -bound, bound)
        return w, b

    w1, b1 = linear(ks[0], ks[1], input_size, H1)
    w2, b2 = linear(ks[2], ks[3], H1, H2)
    w3, b3 = linear(ks[4], ks[5], H2, H3)
    return w1, b1, w2, b2, w3, b3


def reference_forward(x, w1, b1, w2, b2, w3, b3):
    x = x.astype(jnp.float32)
    h1 = jnp.maximum(x @ w1.T + b1, 0.0)
    h2 = jnp.maximum(h1 @ w2.T + b2, 0.0)
    return jax.nn.sigmoid(h2 @ w3.T + b3)


if __name__ == "__main__":
    key = jax.random.PRNGKey(0)
    k_x, k_p = jax.random.split(key)
    params = init_params(k_p, INPUT_SIZE)
    w1, b1, w2, b2, w3, b3 = params
    bf = lambda a: a.astype(jnp.bfloat16).astype(jnp.float32)

    def check(batch, block_b=4096):
        xk = jax.random.fold_in(k_x, batch)
        # Activations supplied as bf16 (halves the dominant HBM stream).
        x = jax.random.normal(xk, (batch, INPUT_SIZE), jnp.float32).astype(jnp.bfloat16)

        out = jax.block_until_ready(net_forward(x, *params, block_b=block_b))
        assert out.shape == (batch, 1)
        assert bool(jnp.all(jnp.isfinite(out)))

        # Reference: same bf16-rounded x / w1 / w2 (w3, biases stay f32 in the
        # kernel), full-precision f32 math.
        ref = reference_forward(x.astype(jnp.float32), bf(w1), b1, bf(w2), b2, w3, b3)
        err = float(jnp.max(jnp.abs(out - ref)))
        assert err < 1e-2, f"B={batch}, block_b={block_b}: max abs err {err}"

    check(32)                  # small batch, single 128-row tile (ragged reads)
    check(200)                 # ragged batch, 2 in-kernel sub-chunks
    check(200, block_b=128)    # multi-step grid with a ragged last block

    print("KERNEL_OK")
</pallas_src>

<mosaic_0001>
module attributes {stable_mosaic.version = 11 : i64} {
  func.func @mlp_kernel(%arg0: i32, %arg1: memref<128x16xbf16, #tpu.memory_space<vmem>>, %arg2: memref<64x16xbf16, #tpu.memory_space<vmem>>, %arg3: memref<64x1xf32, #tpu.memory_space<vmem>>, %arg4: memref<32x64xbf16, #tpu.memory_space<vmem>>, %arg5: memref<32x1xf32, #tpu.memory_space<vmem>>, %arg6: memref<32x1xf32, #tpu.memory_space<vmem>>, %arg7: memref<1x1xf32, #tpu.memory_space<vmem>>, %arg8: memref<1x128xf32, #tpu.memory_space<vmem>>) attributes {dimension_semantics = [#tpu.dimension_semantics<parallel>], iteration_bounds = array<i64: 1>, scalar_prefetch = 0 : i64, scratch_operands = 0 : i64, tpu.core_type = #tpu.core_type<tc>, window_params = [{transform_indices = @transform_0, window_bounds = array<i64: 128, 16>}, {pipeline_mode = #tpu.pipeline_mode<synchronous>, transform_indices = @transform_1, window_bounds = array<i64: 64, 16>}, {pipeline_mode = #tpu.pipeline_mode<synchronous>, transform_indices = @transform_2, window_bounds = array<i64: 64, 1>}, {pipeline_mode = #tpu.pipeline_mode<synchronous>, transform_indices = @transform_3, window_bounds = array<i64: 32, 64>}, {pipeline_mode = #tpu.pipeline_mode<synchronous>, transform_indices = @transform_4, window_bounds = array<i64: 32, 1>}, {pipeline_mode = #tpu.pipeline_mode<synchronous>, transform_indices = @transform_5, window_bounds = array<i64: 32, 1>}, {pipeline_mode = #tpu.pipeline_mode<synchronous>, transform_indices = @transform_6, window_bounds = array<i64: 1, 1>}, {transform_indices = @transform_7, window_bounds = array<i64: 1, 128>}]} {
    %c0 = arith.constant 0 : index
    %c0_0 = arith.constant 0 : index
    %0 = vector.load %arg2[%c0, %c0_0] : memref<64x16xbf16, #tpu.memory_space<vmem>>, vector<64x16xbf16>
    %c0_1 = arith.constant 0 : index
    %c0_2 = arith.constant 0 : index
    %1 = vector.load %arg4[%c0_1, %c0_2] : memref<32x64xbf16, #tpu.memory_space<vmem>>, vector<32x64xbf16>
    %c0_3 = arith.constant 0 : index
    %c0_4 = arith.constant 0 : index
    %2 = vector.load %arg3[%c0_3, %c0_4] : memref<64x1xf32, #tpu.memory_space<vmem>>, vector<64x1xf32>
    %3 = vector.shape_cast %2 : vector<64x1xf32> to vector<64x1xf32>
    %4 = vector.broadcast %3 : vector<64x1xf32> to vector<64x128xf32>
    %c0_5 = arith.constant 0 : index
    %c0_6 = arith.constant 0 : index
    %5 = vector.load %arg5[%c0_5, %c0_6] : memref<32x1xf32, #tpu.memory_space<vmem>>, vector<32x1xf32>
    %6 = vector.shape_cast %5 : vector<32x1xf32> to vector<32x1xf32>
    %7 = vector.broadcast %6 : vector<32x1xf32> to vector<32x128xf32>
    %c0_7 = arith.constant 0 : index
    %c0_8 = arith.constant 0 : index
    %8 = vector.load %arg7[%c0_7, %c0_8] : memref<1x1xf32, #tpu.memory_space<vmem>>, vector<1x1xf32>
    %9 = vector.shape_cast %8 : vector<1x1xf32> to vector<1x1xf32>
    %10 = vector.broadcast %9 : vector<1x1xf32> to vector<1x128xf32>
    %c0_9 = arith.constant 0 : index
    %c0_10 = arith.constant 0 : index
    %11 = vector.load %arg6[%c0_9, %c0_10] : memref<32x1xf32, #tpu.memory_space<vmem>>, vector<32x1xf32>
    %12 = vector.shape_cast %11 : vector<32x1xf32> to vector<32x1xf32>
    %13 = vector.broadcast %12 : vector<32x1xf32> to vector<32x128xf32>
    %c0_i32 = arith.constant 0 : i32
    %c128_i32 = arith.constant 128 : i32
    %14 = arith.muli %c0_i32, %c128_i32 : i32
    %15 = tpu.assume_multiple %14, 128 : i32
    %16 = arith.index_cast %15 : i32 to index
    %c0_11 = arith.constant 0 : index
    %17 = vector.load %arg1[%16, %c0_11] : memref<128x16xbf16, #tpu.memory_space<vmem>>, vector<128x16xbf16>
    %18 = tpu.transpose %17, [1, 0] : vector<128x16xbf16> -> vector<16x128xbf16>
    %cst = arith.constant dense<0.000000e+00> : vector<64x128xf32>
    %19 = tpu.matmul %0, %18, %cst {dimension_numbers = #tpu.dot_dimension_numbers<[1], [0], [0], [1], [0, 0, 1, 1], [], []>} : vector<64x16xbf16>, vector<16x128xbf16>, vector<64x128xf32> -> vector<64x128xf32>
    %20 = arith.addf %19, %4 : vector<64x128xf32>
    %cst_12 = arith.constant 0.000000e+00 : f32
    %21 = vector.broadcast %cst_12 : f32 to vector<64x128xf32>
    %22 = arith.maximumf %20, %21 : vector<64x128xf32>
    %23 = arith.truncf %22 : vector<64x128xf32> to vector<64x128xbf16>
    %cst_13 = arith.constant dense<0.000000e+00> : vector<32x128xf32>
    %24 = tpu.matmul %1, %23, %cst_13 {dimension_numbers = #tpu.dot_dimension_numbers<[1], [0], [0], [1], [0, 0, 1, 1], [], []>} : vector<32x64xbf16>, vector<64x128xbf16>, vector<32x128xf32> -> vector<32x128xf32>
    %25 = arith.addf %24, %7 : vector<32x128xf32>
    %cst_14 = arith.constant 0.000000e+00 : f32
    %26 = vector.broadcast %cst_14 : f32 to vector<32x128xf32>
    %27 = arith.maximumf %25, %26 : vector<32x128xf32>
    %28 = arith.mulf %27, %13 : vector<32x128xf32>
    %cst_15 = arith.constant dense<0.000000e+00> : vector<128xf32>
    %29 = vector.multi_reduction <add>, %28, %cst_15 [0] : vector<32x128xf32> to vector<128xf32>
    %30 = vector.shape_cast %29 : vector<128xf32> to vector<1x128xf32>
    %31 = arith.addf %30, %10 : vector<1x128xf32>
    %cst_16 = arith.constant 0.000000e+00 : f32
    %32 = vector.broadcast %cst_16 : f32 to vector<1x128xf32>
    %33 = arith.subf %32, %31 : vector<1x128xf32>
    %34 = math.exp %33 : vector<1x128xf32>
    %cst_17 = arith.constant 1.000000e+00 : f32
    %35 = vector.broadcast %cst_17 : f32 to vector<1x128xf32>
    %36 = arith.addf %35, %34 : vector<1x128xf32>
    %37 = tpu.reciprocal %36 {approx = true} : vector<1x128xf32> -> vector<1x128xf32>
    %c0_18 = arith.constant 0 : index
    %38 = arith.index_cast %15 : i32 to index
    %39 = vector.load %arg8[%c0_18, %38] : memref<1x128xf32, #tpu.memory_space<vmem>>, vector<1x128xf32>
    tpu.vector_store %arg8[%c0_18, %38], %37 {strides = array<i32>} : memref<1x128xf32, #tpu.memory_space<vmem>>, vector<1x128xf32>,
    %c1_i32 = arith.constant 1 : i32
    return
  }
  func.func @transform_0(%arg0: i32) -> (i32, i32) {
    %c0_i32 = arith.constant 0 : i32
    %c0_i32_0 = arith.constant 0 : i32
    return %arg0, %c0_i32 : i32, i32
  }
  func.func @transform_1(%arg0: i32) -> (i32, i32) {
    %c0_i32 = arith.constant 0 : i32
    %c0_i32_0 = arith.constant 0 : i32
    %c0_i32_1 = arith.constant 0 : i32
    return %c0_i32, %c0_i32_0 : i32, i32
  }
  func.func @transform_2(%arg0: i32) -> (i32, i32) {
    %c0_i32 = arith.constant 0 : i32
    %c0_i32_0 = arith.constant 0 : i32
    %c0_i32_1 = arith.constant 0 : i32
    return %c0_i32, %c0_i32_0 : i32, i32
  }
  func.func @transform_3(%arg0: i32) -> (i32, i32) {
    %c0_i32 = arith.constant 0 : i32
    %c0_i32_0 = arith.constant 0 : i32
    %c0_i32_1 = arith.constant 0 : i32
    return %c0_i32, %c0_i32_0 : i32, i32
  }
  func.func @transform_4(%arg0: i32) -> (i32, i32) {
    %c0_i32 = arith.constant 0 : i32
    %c0_i32_0 = arith.constant 0 : i32
    %c0_i32_1 = arith.constant 0 : i32
    return %c0_i32, %c0_i32_0 : i32, i32
  }
  func.func @transform_5(%arg0: i32) -> (i32, i32) {
    %c0_i32 = arith.constant 0 : i32
    %c0_i32_0 = arith.constant 0 : i32
    %c0_i32_1 = arith.constant 0 : i32
    return %c0_i32, %c0_i32_0 : i32, i32
  }
  func.func @transform_6(%arg0: i32) -> (i32, i32) {
    %c0_i32 = arith.constant 0 : i32
    %c0_i32_0 = arith.constant 0 : i32
    %c0_i32_1 = arith.constant 0 : i32
    return %c0_i32, %c0_i32_0 : i32, i32
  }
  func.func @transform_7(%arg0: i32) -> (i32, i32) {
    %c0_i32 = arith.constant 0 : i32
    %c0_i32_0 = arith.constant 0 : i32
    return %c0_i32, %arg0 : i32, i32
  }
}

</mosaic_0001>

<bundles_post_ra>
// kernel: net_forward.1
= control target key start
LH: loop header
LB: loop body
LE: loop exit
PB: predicated region body
PF: predicated region fallthrough
CT: control target
= control target key end

     0   :  { %vm220_vm0 = vcmask 130048   ;;  %v462_v8 = vmov 0   ;;  %vm308_vm1 = vcmask 523264   ;;  %s611_s0 = inlined_call_operand.vmem [shape: bf16[32,16], index: 0, kind: input, shape index: {}]   ;;  %s612_s2 = inlined_call_operand.vmem [shape: f32[64,1], index: 2, kind: input, shape index: {}]   ;;  %s613_s4 = inlined_call_operand.vmem [shape: f32[32,1], index: 4, kind: input, shape index: {}]   ;;  %s614_s6 = inlined_call_operand.<no memory space> [shape: f32[1,1], index: 6, kind: input, shape index: {}]   ;;  %s615_s5 = inlined_call_operand.vmem [shape: f32[32,1], index: 5, kind: input, shape index: {}]   ;;  %s616_s1 = inlined_call_operand.vmem [shape: bf16[64,16], index: 1, kind: input, shape index: {}]   ;;  %s617_s3 = inlined_call_operand.vmem [shape: bf16[32,64], index: 3, kind: input, shape index: {}]   ;;  %s618_s7 = inlined_call_operand.vmem [shape: f32[1,128], index: 7, kind: output, shape index: {}]  }
   0x1   :  { %v437_v0 = vld [vmem:[%s611_s0 + $0x38] sm:$0xff]  ;;  %v436_v2 = vld [vmem:[%s611_s0 + $0x30] sm:$0xff]  ;;  %v435_v4 = vld [vmem:[%s611_s0 + $0x28] sm:$0xff]  ;;  %455 = vset.pattern.permute.xlu0 %v462_v8  ;;  %456 = vset.pattern.permute.xlu1 %v462_v8  ;;  %v12_v23 = vstv %s614_s6 }
   0x2   :  { %v255_v1 = vsel %vm220_vm0, %v437_v0, 0  ;;  %v252_v3 = vsel %vm220_vm0, %v436_v2, 0  ;;  %v249_v5 = vsel %vm220_vm0, %v435_v4, 0  ;;  %v47_v6 = vld [vmem:[%s612_s2 + $0x30] sm:$0xff]  ;;  %v434_v7 = vld [vmem:[%s611_s0 + $0x20] sm:$0xff]  ;;  %457 = vset.pattern.permute.xlu2 %v462_v8  ;;  %v433_v11 = vld [vmem:[%s611_s0 + $0x18] sm:$0xff] }
   0x3   :  { %439 = vmatpush.bf16.xpose.msra.mxu3 %v255_v1  ;;  %257 = vmatpush.bf16.xpose.msra.mxu0 %v255_v1  ;;  %v246_v9 = vsel %vm220_vm0, %v434_v7, 0  ;;  %v45_v10 = vld [vmem:[%s612_s2 + $0x20] sm:$0xff]  ;;  %v243_v12 = vsel %vm220_vm0, %v433_v11, 0  ;;  %v48_v13 = vld [vmem:[%s612_s2 + $0x38] sm:$0xff]  ;;  %v46_v14 = vld [vmem:[%s612_s2 + $0x28] sm:$0xff] }
   0x4   :  { %438 = vmatpush.bf16.xpose.msra.mxu2 %v255_v1  ;;  %81 = vperm.xlu0 %455, %v47_v6   ;;  %v432_v15 = vld [vmem:[%s611_s0 + $0x10] sm:$0xff]  ;;  %v41_v17 = vld [vmem:[%s612_s2] sm:$0xff]  ;;  %v42_v18 = vld [vmem:[%s612_s2 + $0x8] sm:$0xff]  ;;  %13 = vst [vmem:[#allocation2] sm:$0x1] %v12_v23 }
   0x5   :  { %71 = vperm.xlu1 %456, %v45_v10   ;;  %v240_v16 = vsel %vm220_vm0, %v432_v15, 0  ;;  %v431_v19 = vld [vmem:[%s611_s0 + $0x8] sm:$0xff]  ;;  %v91_v22 = vld [vmem:[%s613_s4 + $0x10] sm:$0xff]  ;;  %v430_v25 = vld [vmem:[%s611_s0] sm:$0xff] }
   0x6   :  { %v237_v20 = vsel %vm220_vm0, %v431_v19, 0  ;;  %v90_v21 = vld [vmem:[%s613_s4 + $0x8] sm:$0xff]  ;;  %v43_v24 = vld [vmem:[%s612_s2 + $0x10] sm:$0xff]  ;;  %v234_v26 = vsel %vm220_vm0, %v430_v25, 0  ;;  %v120_v27 = vld [vmem:[%s615_s5] sm:$0xff] }
   0x7   :  { %61 = vperm.xlu2 %457, %v43_v24   ;;  %v121_v28 = vld [vmem:[%s615_s5 + $0x8] sm:$0xff]  ;;  %v44_v29 = vld [vmem:[%s612_s2 + $0x18] sm:$0xff]  ;;  %v426_v30 = vld [vmem:[%s616_s1 + $0x10] sm:$0xff] }
   0x8   :  { %v424_v31 = vld [vmem:[%s616_s1] sm:$0xff]  ;;  %v425_v32 = vld [vmem:[%s616_s1 + $0x8] sm:$0xff]  ;;  %v123_v33 = vld [vmem:[%s615_s5 + $0x18] sm:$0xff] }
   0x9   :  { %v89_v35 = vld [vmem:[%s613_s4] sm:$0xff]  ;;  %v92_v36 = vld [vmem:[%s613_s4 + $0x18] sm:$0xff]  ;;  %v122_v38 = vld [vmem:[%s615_s5 + $0x10] sm:$0xff] }
   0xa   :  { %v427_v37 = vld [vmem:[%s616_s1 + $0x18] sm:$0xff]  ;;  %v428_v11 = vld [vmem:[%s617_s3] sm:$0xff] }
   0xb   :  { %441 = vmatpush.bf16.xpose.msra.mxu3 %v252_v3  ;;  %258 = vmatpush.bf16.xpose.msra.mxu0 %v252_v3  ;;  %v113_v34 = vld [vmem:[#allocation2] sm:$0x1] }
   0xc   :  { %440 = vmatpush.bf16.xpose.msra.mxu2 %v252_v3  ;;  %86 = vperm.xlu0 %455, %v48_v13  }
   0xd   :  { %76 = vperm.xlu1 %456, %v46_v14  }
   0xf   :  { %66 = vperm.xlu2 %457, %v44_v29  }
  0x13   :  { %443 = vmatpush.bf16.xpose.msra.mxu3 %v249_v5  ;;  %259 = vmatpush.bf16.xpose.msra.mxu0 %v249_v5 }
  0x14   :  { %442 = vmatpush.bf16.xpose.msra.mxu2 %v249_v5  ;;  %51 = vperm.xlu0 %455, %v41_v17  }
  0x15   :  { %56 = vperm.xlu1 %456, %v42_v18  }
  0x17   :  { %95 = vperm.xlu2 %457, %v89_v35  }
  0x1b   :  { %445 = vmatpush.bf16.xpose.msra.mxu3 %v246_v9  ;;  %260 = vmatpush.bf16.xpose.msra.mxu0 %v246_v9 }
  0x1c   :  { %444 = vmatpush.bf16.xpose.msra.mxu2 %v246_v9  ;;  %100 = vperm.xlu0 %455, %v90_v21  }
  0x1d   :  { %105 = vperm.xlu1 %456, %v91_v22  }
  0x1f   :  { %110 = vperm.xlu2 %457, %v92_v36  }
  0x23   :  { %447 = vmatpush.bf16.xpose.msra.mxu3 %v243_v12  ;;  %261 = vmatpush.bf16.xpose.msra.mxu0 %v243_v12 }
  0x24   :  { %446 = vmatpush.bf16.xpose.msra.mxu2 %v243_v12  ;;  %126 = vperm.xlu0 %455, %v120_v27   ;;  %v429_v12 = vld [vmem:[%s617_s3 + $0x8] sm:$0xff] }
  0x25   :  { %131 = vperm.xlu1 %456, %v121_v28  }
  0x27   :  { %136 = vperm.xlu2 %457, %v122_v38  }
  0x2b   :  { %449 = vmatpush.bf16.xpose.msra.mxu3 %v240_v16  ;;  %262 = vmatpush.bf16.xpose.msra.mxu0 %v240_v16 }
  0x2c   :  { %448 = vmatpush.bf16.xpose.msra.mxu2 %v240_v16  ;;  %141 = vperm.xlu0 %455, %v123_v33  }
  0x2d   :  { %116 = vperm.xlu1 %456, %v113_v34  }
  0x33   :  { %451 = vmatpush.bf16.xpose.msra.mxu3 %v237_v20  ;;  %263 = vmatpush.bf16.xpose.msra.mxu0 %v237_v20 }
  0x34   :  { %450 = vmatpush.bf16.xpose.msra.mxu2 %v237_v20 }
  0x3b   :  { %453 = vmatpush.bf16.xpose.msra.mxu3 %v234_v26  ;;  %264 = vmatpush.bf16.xpose.msra.mxu0 %v234_v26 }
  0x3c   :  { %452 = vmatpush.bf16.xpose.msra.mxu2 %v234_v26 }
  0x42   :  { %412 = vmatmul.msk.bf16.vlgmr.msra.gmra.mxu3 %vm220_vm0, %v426_v30  ;;  %410 = vmatmul.msk.bf16.vlgmr.msra.gmra.mxu0 %vm220_vm0, %v424_v31 }
  0x43   :  { %411 = vmatmul.msk.bf16.vlgmr.msra.gmra.mxu2 %vm220_vm0, %v425_v32 }
  0x52   :  { %413 = vmatmul.msk.bf16.gmra.mxu3 %vm220_vm0, %v427_v37 }
  0x61   :  { %v62_v45 = vpop.permute.xlu2 %61 }
  0x69   :  { %v67_v57 = vpop.permute.xlu2 %66 }
  0x71   :  { %v96_v14 = vpop.permute.xlu2 %95 }
  0x76   :  { %v82_v41 = vpop.permute.xlu0 %81 }
  0x77   :  { %v72_v42 = vpop.permute.xlu1 %71 }
  0x79   :  { %v111_v18 = vpop.permute.xlu2 %110 }
  0x7e   :  { %v87_v47 = vpop.permute.xlu0 %86 }
  0x7f   :  { %v77_v48 = vpop.permute.xlu1 %76 }
  0x81   :  { %v137_v29 = vpop.permute.xlu2 %136 }
  0x86   :  { %v52_v63 = vpop.permute.xlu0 %51 }
  0x87   :  { %v57_v1 = vpop.permute.xlu1 %56 }
  0x8e   :  { %v101_v15 = vpop.permute.xlu0 %100 }
  0x8f   :  { %v106_v17 = vpop.permute.xlu1 %105 }
  0x96   :  { %v127_v23 = vpop.permute.xlu0 %126 }
  0x97   :  { %v132_v27 = vpop.permute.xlu1 %131 }
  0x9e   :  { %v142_v36 = vpop.permute.xlu0 %141 }
  0xbf   :  { %v266_v46 = vpop.f32.mrf.mxu0 }
  0xc0   :  { %v267_v2 = vadd.f32 %v266_v46, %v52_v63 }
  0xc2   :  { %v286_v7 = vmax.f32 %v267_v2, 0.0 }
  0xc5   :  { %v276_v39 = vpop.f32.mrf.mxu3 }
  0xc6   :  { %v271_v43 = vpop.f32.mrf.mxu2  ;;  %v277_v54 = vadd.f32 %v276_v39, %v72_v42 }
  0xc7   :  { %v272_v59 = vadd.f32 %v271_v43, %v62_v45  ;;  %v268_v62 = vpop.f32.mrf.mxu0 }
  0xc8   :  { %v290_v0 = vmax.f32 %v277_v54, 0.0  ;;  %v269_v3 = vadd.f32 %v268_v62, %v57_v1 }
  0xc9   :  { %v288_v4 = vmax.f32 %v272_v59, 0.0 }
  0xca   :  { %v287_v8 = vmax.f32 %v269_v3, 0.0 }
  0xcc   :  { %v294_v10 = vpack.c.bf16 %v287_v8, %v286_v7 }
  0xcd   :  { %v278_v40 = vpop.f32.mrf.mxu3 }
  0xce   :  { %v279_v51 = vadd.f32 %v278_v40, %v77_v48  ;;  %v273_v53 = vpop.f32.mrf.mxu2 }
  0xcf   :  { %v274_v60 = vadd.f32 %v273_v53, %v67_v57 }
  0xd0   :  { %v291_v58 = vmax.f32 %v279_v51, 0.0 }
  0xd1   :  { %v289_v5 = vmax.f32 %v274_v60, 0.0 }
  0xd2   :  { %v296_v6 = vpack.c.bf16 %v291_v58, %v290_v0 }
  0xd3   :  { %v295_v9 = vpack.c.bf16 %v289_v5, %v288_v4 }
  0xd5   :  { %v281_v44 = vpop.f32.mrf.mxu3 }
  0xd6   :  { %v282_v49 = vadd.f32 %v281_v44, %v82_v41  ;;  %v117_v44 = vpop.permute.xlu1 %116 }
  0xd7   :  { %v119_v46 = vperm.slane %v117_v44, 0 }
  0xd8   :  { %v292_v55 = vmax.f32 %v282_v49, 0.0 }
  0xdd   :  { %v283_v50 = vpop.f32.mrf.mxu3 }
  0xde   :  { %v284_v52 = vadd.f32 %v283_v50, %v87_v47 }
  0xe0   :  { %v293_v56 = vmax.f32 %v284_v52, 0.0 }
  0xe2   :  { %v297_v61 = vpack.c.bf16 %v293_v56, %v292_v55 }
  0xe4   :  { %319 = vmatpush.bf16.msra.mxu1 %v297_v61 }
  0xe8   :  { %320 = vmatpush.bf16.msra.mxu1 %v296_v6 }
  0xec   :  { %321 = vmatpush.bf16.msra.mxu1 %v295_v9 }
  0xf0   :  { %322 = vmatpush.bf16.msra.mxu1 %v294_v10 }
  0xf3   :  { %422 = vmatmul.msk.bf16.vlgmr.msra.gmra.mxu1 %vm308_vm1, %v428_v11 }
 0x103   :  { %423 = vmatmul.msk.bf16.gmra.mxu1 %vm308_vm1, %v429_v12 }
 0x170   :  { %v324_v13 = vpop.f32.mrf.mxu1 }
 0x171   :  { %v325_v21 = vadd.f32 %v324_v13, %v96_v14 }
 0x173   :  { %v334_v25 = vmax.f32 %v325_v21, 0.0 }
 0x175   :  { %v338_v31 = vmul.f32 %v334_v25, %v127_v23 }
 0x178   :  { %v326_v16 = vpop.f32.mrf.mxu1 }
 0x179   :  { %v327_v19 = vadd.f32 %v326_v16, %v101_v15 }
 0x17b   :  { %v335_v24 = vmax.f32 %v327_v19, 0.0 }
 0x17d   :  { %v339_v28 = vmul.f32 %v335_v24, %v132_v27 }
 0x17f   :  { %v342_v34 = vadd.f32 %v339_v28, %v338_v31 }
 0x180   :  { %v329_v20 = vpop.f32.mrf.mxu1 }
 0x181   :  { %v330_v22 = vadd.f32 %v329_v20, %v106_v17 }
 0x183   :  { %v336_v26 = vmax.f32 %v330_v22, 0.0 }
 0x185   :  { %v340_v32 = vmul.f32 %v336_v26, %v137_v29 }
 0x187   :  { %v343_v37 = vadd.f32 %v342_v34, %v340_v32 }
 0x188   :  { %v331_v30 = vpop.f32.mrf.mxu1 }
 0x189   :  { %v332_v33 = vadd.f32 %v331_v30, %v111_v18 }
 0x18b   :  { %v337_v35 = vmax.f32 %v332_v33, 0.0 }
 0x18d   :  { %v341_v38 = vmul.f32 %v337_v35, %v142_v36 }
 0x18f   :  { %v344_v39 = vadd.f32 %v343_v37, %v341_v38 }
 0x191   :  { %v345_v40 = vrot.slane %v344_v39, 4 }
 0x193   :  { %v346_v41 = vadd.f32 %v345_v40, %v344_v39 }
 0x195   :  { %v347_v42 = vrot.slane %v346_v41, 2 }
 0x197   :  { %v348_v43 = vadd.f32 %v347_v42, %v346_v41 }
 0x199   :  { %v349_v45 = vrot.slane %v348_v43, 1 }
 0x19b   :  { %v350_v47 = vadd.f32 %v349_v45, %v348_v43 }
 0x19d   :  { %v351_v48 = vadd.f32 %v350_v47, %v119_v46 }
 0x19f   :  { %v352_v49 = vsub.f32 0.0, %v351_v48 }
 0x1a1   :  { %v353_v50 = vmul.f32 1.442695, %v352_v49 }
 0x1a3   :  { %458 = vpow2.f32 %v353_v50 }
 0x1a9   :  { %v459_v51 = vpop.eup %458 }
 0x1aa   :  { %v355_v52 = vadd.f32 1.0, %v459_v51 }
 0x1ac   :  { %460 = vrcp.f32 %v355_v52 }
 0x1b2   :  { %v461_v53 = vpop.eup %460 }
 0x1b3   :  { %357 = vst [vmem:[%s618_s7] sm:$0x1] %v461_v53 }

</bundles_post_ra>
